<compile_context>
chip_gen: v6e
topology: v6e:2x2x1
jax: 0.10.0
libtpu: 0.0.40
codegen_flags: <defaults>
</compile_context>

<pallas_src>
import functools

import jax
import jax.numpy as jnp
from jax.experimental import pallas as pl
from jax.experimental.pallas import tpu as pltpu


# Hidden sizes are fixed by the PyTorch module: 64 -> 32 -> 16 -> 1.
_H1, _H2, _H3, _H4 = 64, 32, 16, 1
_B1_OFF = 0
_B2_OFF = _B1_OFF + _H1          # 64
_B3_OFF = _B2_OFF + _H2          # 96
_B4_OFF = _B3_OFF + _H3          # 112
_B_TOT = _B4_OFF + _H4           # 113


def _round_up(x, m):
    return (x + m - 1) // m * m


def mlp_kernel(xt_ref, w1_ref, w2_ref, w3_ref, w4_ref, b_ref, o_ref):
    """Transposed layout: activations are (features, batch_tile); batch on lanes.

    xt_ref: (D, TB)        compute dtype (bf16 or f32)
    w1_ref: (64, D)        w2_ref: (32, 64)   w3_ref: (16, 32)   -> MXU
    w4_ref: (16, 1) f32    -> VPU mul + sublane reduce (avoids N=1 matmul)
    b_ref : (113, 1) f32   packed biases [b1|b2|b3|b4]
    o_ref : (1, TB)  f32   lane-dense output row
    """
    cdt = w1_ref.dtype  # MXU compute dtype

    x = xt_ref[...]                                                   # (D, TB)

    # Layer 1: (64, D) @ (D, TB) -> relu
    h = jnp.dot(w1_ref[...], x, preferred_element_type=jnp.float32)
    h = jnp.maximum(h + b_ref[_B1_OFF:_B2_OFF, :], 0.0).astype(cdt)   # (64, TB)

    # Layer 2: (32, 64) @ (64, TB) -> relu
    h = jnp.dot(w2_ref[...], h, preferred_element_type=jnp.float32)
    h = jnp.maximum(h + b_ref[_B2_OFF:_B3_OFF, :], 0.0).astype(cdt)   # (32, TB)

    # Layer 3: (16, 32) @ (32, TB) -> relu (keep f32; no more MXU after this)
    h = jnp.dot(w3_ref[...], h, preferred_element_type=jnp.float32)
    h = jnp.maximum(h + b_ref[_B3_OFF:_B4_OFF, :], 0.0)               # (16, TB)

    # Layer 4 (out dim = 1): VPU broadcast-mul + XLU sublane reduce.
    h = jnp.sum(w4_ref[...] * h, axis=0, keepdims=True)               # (1, TB)
    h = h + b_ref[_B4_OFF:_B_TOT, :]

    # Sigmoid via tanh -> EUP slot, numerically stable.
    o_ref[...] = (0.5 * (1.0 + jnp.tanh(0.5 * h))).astype(o_ref.dtype)


@functools.partial(jax.jit, static_argnames=("tile_b", "compute_dtype"))
def mlp_forward(x, params, *, tile_b=1024, compute_dtype=jnp.bfloat16):
    """x: (B, input_size) float32. params: PyTorch-layout weights/biases.

    Returns (B, 1) float32, matching Model.forward.
    """
    B, D = x.shape
    w1 = params["w1"].astype(compute_dtype)          # (64, D)
    w2 = params["w2"].astype(compute_dtype)          # (32, 64)
    w3 = params["w3"].astype(compute_dtype)          # (16, 32)
    w4c = params["w4"].T.astype(jnp.float32)         # (16, 1)  stays f32
    bias = jnp.concatenate(
        [params["b1"], params["b2"], params["b3"], params["b4"]], axis=0
    ).astype(jnp.float32)                            # (113, 1)

    # Batch tile: lane-dense multiple of 128; pad the batch up to a full tile.
    tb = int(tile_b) if B >= tile_b else _round_up(max(B, 1), 128)
    Bp = _round_up(B, tb)

    # Transpose + cast fuse into one XLA copy; batch now lives on the lane axis.
    xt = x.astype(compute_dtype).T                   # (D, B)
    if Bp != B:
        xt = jnp.pad(xt, ((0, 0), (0, Bp - B)))

    resident = lambda a: pl.BlockSpec(a.shape, lambda i: (0, 0))  # VMEM-resident

    out_t = pl.pallas_call(
        mlp_kernel,
        out_shape=jax.ShapeDtypeStruct((1, Bp), jnp.float32),
        grid=(Bp // tb,),
        in_specs=[
            pl.BlockSpec((D, tb), lambda i: (0, i)),   # streamed x tile
            resident(w1), resident(w2), resident(w3), resident(w4c),
            resident(bias),
        ],
        out_specs=pl.BlockSpec((1, tb), lambda i: (0, i)),  # lane-dense output
        compiler_params=pltpu.CompilerParams(
            dimension_semantics=("parallel",),          # megacore sharding on v7x
            vmem_limit_bytes=32 * 1024 * 1024,
        ),
    )(xt, w1, w2, w3, w4c, bias)

    return out_t[:, :B].T                              # (B, 1)


def init_params(key, input_size):
    """nn.Linear-style init (uniform +/- 1/sqrt(fan_in)), PyTorch layout:
    weights (out_features, in_features), biases (out_features, 1)."""
    dims = [(input_size, _H1), (_H1, _H2), (_H2, _H3), (_H3, _H4)]
    params = {}
    keys = jax.random.split(key, 2 * len(dims))
    for i, (fan_in, fan_out) in enumerate(dims):
        bound = 1.0 / jnp.sqrt(jnp.float32(fan_in))
        w = jax.random.uniform(keys[2 * i], (fan_out, fan_in),
                               minval=-bound, maxval=bound, dtype=jnp.float32)
        b = jax.random.uniform(keys[2 * i + 1], (fan_out, 1),
                               minval=-bound, maxval=bound, dtype=jnp.float32)
        params[f"w{i + 1}"] = w
        params[f"b{i + 1}"] = b
    return params


def reference_forward(x, params):
    h = jnp.maximum(x @ params["w1"].T + params["b1"].T, 0.0)
    h = jnp.maximum(h @ params["w2"].T + params["b2"].T, 0.0)
    h = jnp.maximum(h @ params["w3"].T + params["b3"].T, 0.0)
    return jax.nn.sigmoid(h @ params["w4"].T + params["b4"].T)


if __name__ == "__main__":
    key = jax.random.PRNGKey(0)
    k_x, k_x2, k_p = jax.random.split(key, 3)

    input_size = 32
    params = init_params(k_p, input_size)

    # Small case (matches the module's typical usage).
    batch = 8
    x = jax.random.normal(k_x, (batch, input_size), dtype=jnp.float32)
    ref = reference_forward(x, params)

    # f32 compute path: exact semantics, tight tolerance.
    out_f32 = jax.block_until_ready(
        mlp_forward(x, params, compute_dtype=jnp.float32))
    assert out_f32.shape == (batch, 1), out_f32.shape
    assert jnp.allclose(out_f32, ref, atol=1e-5, rtol=1e-5)

    # bf16 MXU path (default): looser tolerance.
    out_bf16 = jax.block_until_ready(mlp_forward(x, params))
    assert out_bf16.shape == (batch, 1), out_bf16.shape
    assert jnp.allclose(out_bf16, ref, atol=2e-2, rtol=0.0)

    # Larger, non-multiple-of-tile batch: exercises padding + multi-step grid.
    batch2 = 300
    x2 = jax.random.normal(k_x2, (batch2, input_size), dtype=jnp.float32)
    ref2 = reference_forward(x2, params)
    out2 = jax.block_until_ready(mlp_forward(x2, params, tile_b=128))
    assert out2.shape == (batch2, 1), out2.shape
    assert jnp.allclose(out2, ref2, atol=2e-2, rtol=0.0)

    print("KERNEL_OK")
</pallas_src>

<mosaic_0001>
module attributes {stable_mosaic.version = 11 : i64} {
  func.func @mlp_kernel(%arg0: i32, %arg1: memref<32x128xf32, #tpu.memory_space<vmem>>, %arg2: memref<64x32xf32, #tpu.memory_space<vmem>>, %arg3: memref<32x64xf32, #tpu.memory_space<vmem>>, %arg4: memref<16x32xf32, #tpu.memory_space<vmem>>, %arg5: memref<16x1xf32, #tpu.memory_space<vmem>>, %arg6: memref<113x1xf32, #tpu.memory_space<vmem>>, %arg7: memref<1x128xf32, #tpu.memory_space<vmem>>) attributes {dimension_semantics = [#tpu.dimension_semantics<parallel>], iteration_bounds = array<i64: 1>, scalar_prefetch = 0 : i64, scratch_operands = 0 : i64, tpu.core_type = #tpu.core_type<tc>, window_params = [{transform_indices = @transform_0, window_bounds = array<i64: 32, 128>}, {pipeline_mode = #tpu.pipeline_mode<synchronous>, transform_indices = @transform_1, window_bounds = array<i64: 64, 32>}, {pipeline_mode = #tpu.pipeline_mode<synchronous>, transform_indices = @transform_2, window_bounds = array<i64: 32, 64>}, {pipeline_mode = #tpu.pipeline_mode<synchronous>, transform_indices = @transform_3, window_bounds = array<i64: 16, 32>}, {pipeline_mode = #tpu.pipeline_mode<synchronous>, transform_indices = @transform_4, window_bounds = array<i64: 16, 1>}, {pipeline_mode = #tpu.pipeline_mode<synchronous>, transform_indices = @transform_5, window_bounds = array<i64: 113, 1>}, {transform_indices = @transform_6, window_bounds = array<i64: 1, 128>}]} {
    %c0 = arith.constant 0 : index
    %c0_0 = arith.constant 0 : index
    %0 = vector.load %arg1[%c0, %c0_0] : memref<32x128xf32, #tpu.memory_space<vmem>>, vector<32x128xf32>
    %c0_1 = arith.constant 0 : index
    %c0_2 = arith.constant 0 : index
    %1 = vector.load %arg2[%c0_1, %c0_2] : memref<64x32xf32, #tpu.memory_space<vmem>>, vector<64x32xf32>
    %cst = arith.constant dense<0.000000e+00> : vector<64x128xf32>
    %2 = tpu.matmul %1, %0, %cst {dimension_numbers = #tpu.dot_dimension_numbers<[1], [0], [0], [1], [0, 0, 1, 1], [], []>} : vector<64x32xf32>, vector<32x128xf32>, vector<64x128xf32> -> vector<64x128xf32>
    %c0_3 = arith.constant 0 : index
    %c0_4 = arith.constant 0 : index
    %3 = vector.load %arg6[%c0_3, %c0_4] : memref<113x1xf32, #tpu.memory_space<vmem>>, vector<64x1xf32>
    %4 = vector.broadcast %3 : vector<64x1xf32> to vector<64x128xf32>
    %5 = arith.addf %2, %4 : vector<64x128xf32>
    %cst_5 = arith.constant 0.000000e+00 : f32
    %6 = vector.broadcast %cst_5 : f32 to vector<64x128xf32>
    %7 = arith.maximumf %5, %6 : vector<64x128xf32>
    %c0_6 = arith.constant 0 : index
    %c0_7 = arith.constant 0 : index
    %8 = vector.load %arg3[%c0_6, %c0_7] : memref<32x64xf32, #tpu.memory_space<vmem>>, vector<32x64xf32>
    %cst_8 = arith.constant dense<0.000000e+00> : vector<32x128xf32>
    %9 = tpu.matmul %8, %7, %cst_8 {dimension_numbers = #tpu.dot_dimension_numbers<[1], [0], [0], [1], [0, 0, 1, 1], [], []>} : vector<32x64xf32>, vector<64x128xf32>, vector<32x128xf32> -> vector<32x128xf32>
    %c64 = arith.constant 64 : index
    %c0_9 = arith.constant 0 : index
    %10 = vector.load %arg6[%c64, %c0_9] : memref<113x1xf32, #tpu.memory_space<vmem>>, vector<32x1xf32>
    %11 = vector.broadcast %10 : vector<32x1xf32> to vector<32x128xf32>
    %12 = arith.addf %9, %11 : vector<32x128xf32>
    %cst_10 = arith.constant 0.000000e+00 : f32
    %13 = vector.broadcast %cst_10 : f32 to vector<32x128xf32>
    %14 = arith.maximumf %12, %13 : vector<32x128xf32>
    %c0_11 = arith.constant 0 : index
    %c0_12 = arith.constant 0 : index
    %15 = vector.load %arg4[%c0_11, %c0_12] : memref<16x32xf32, #tpu.memory_space<vmem>>, vector<16x32xf32>
    %cst_13 = arith.constant dense<0.000000e+00> : vector<16x128xf32>
    %16 = tpu.matmul %15, %14, %cst_13 {dimension_numbers = #tpu.dot_dimension_numbers<[1], [0], [0], [1], [0, 0, 1, 1], [], []>} : vector<16x32xf32>, vector<32x128xf32>, vector<16x128xf32> -> vector<16x128xf32>
    %c96 = arith.constant 96 : index
    %c0_14 = arith.constant 0 : index
    %17 = vector.load %arg6[%c96, %c0_14] : memref<113x1xf32, #tpu.memory_space<vmem>>, vector<16x1xf32>
    %18 = vector.broadcast %17 : vector<16x1xf32> to vector<16x128xf32>
    %19 = arith.addf %16, %18 : vector<16x128xf32>
    %cst_15 = arith.constant 0.000000e+00 : f32
    %20 = vector.broadcast %cst_15 : f32 to vector<16x128xf32>
    %21 = arith.maximumf %19, %20 : vector<16x128xf32>
    %c0_16 = arith.constant 0 : index
    %c0_17 = arith.constant 0 : index
    %22 = vector.load %arg5[%c0_16, %c0_17] : memref<16x1xf32, #tpu.memory_space<vmem>>, vector<16x1xf32>
    %23 = vector.broadcast %22 : vector<16x1xf32> to vector<16x128xf32>
    %24 = arith.mulf %23, %21 : vector<16x128xf32>
    %cst_18 = arith.constant dense<0.000000e+00> : vector<128xf32>
    %25 = vector.multi_reduction <add>, %24, %cst_18 [0] : vector<16x128xf32> to vector<128xf32>
    %26 = vector.shape_cast %25 : vector<128xf32> to vector<1x128xf32>
    %c112 = arith.constant 112 : index
    %c0_19 = arith.constant 0 : index
    %27 = vector.load %arg6[%c112, %c0_19] : memref<113x1xf32, #tpu.memory_space<vmem>>, vector<1x1xf32>
    %28 = vector.broadcast %27 : vector<1x1xf32> to vector<1x128xf32>
    %29 = arith.addf %26, %28 : vector<1x128xf32>
    %cst_20 = arith.constant 5.000000e-01 : f32
    %30 = vector.broadcast %cst_20 : f32 to vector<1x128xf32>
    %31 = arith.mulf %30, %29 : vector<1x128xf32>
    %32 = math.tanh %31 : vector<1x128xf32>
    %cst_21 = arith.constant 1.000000e+00 : f32
    %33 = vector.broadcast %cst_21 : f32 to vector<1x128xf32>
    %34 = arith.addf %33, %32 : vector<1x128xf32>
    %cst_22 = arith.constant 5.000000e-01 : f32
    %35 = vector.broadcast %cst_22 : f32 to vector<1x128xf32>
    %36 = arith.mulf %35, %34 : vector<1x128xf32>
    %c0_23 = arith.constant 0 : index
    %c0_24 = arith.constant 0 : index
    %37 = vector.load %arg7[%c0_23, %c0_24] : memref<1x128xf32, #tpu.memory_space<vmem>>, vector<1x128xf32>
    tpu.vector_store %arg7[%c0_23, %c0_24], %36 {strides = array<i32>} : memref<1x128xf32, #tpu.memory_space<vmem>>, vector<1x128xf32>,
    return
  }
  func.func @transform_0(%arg0: i32) -> (i32, i32) {
    %c0_i32 = arith.constant 0 : i32
    %c0_i32_0 = arith.constant 0 : i32
    return %c0_i32, %arg0 : i32, i32
  }
  func.func @transform_1(%arg0: i32) -> (i32, i32) {
    %c0_i32 = arith.constant 0 : i32
    %c0_i32_0 = arith.constant 0 : i32
    %c0_i32_1 = arith.constant 0 : i32
    return %c0_i32, %c0_i32_0 : i32, i32
  }
  func.func @transform_2(%arg0: i32) -> (i32, i32) {
    %c0_i32 = arith.constant 0 : i32
    %c0_i32_0 = arith.constant 0 : i32
    %c0_i32_1 = arith.constant 0 : i32
    return %c0_i32, %c0_i32_0 : i32, i32
  }
  func.func @transform_3(%arg0: i32) -> (i32, i32) {
    %c0_i32 = arith.constant 0 : i32
    %c0_i32_0 = arith.constant 0 : i32
    %c0_i32_1 = arith.constant 0 : i32
    return %c0_i32, %c0_i32_0 : i32, i32
  }
  func.func @transform_4(%arg0: i32) -> (i32, i32) {
    %c0_i32 = arith.constant 0 : i32
    %c0_i32_0 = arith.constant 0 : i32
    %c0_i32_1 = arith.constant 0 : i32
    return %c0_i32, %c0_i32_0 : i32, i32
  }
  func.func @transform_5(%arg0: i32) -> (i32, i32) {
    %c0_i32 = arith.constant 0 : i32
    %c0_i32_0 = arith.constant 0 : i32
    %c0_i32_1 = arith.constant 0 : i32
    return %c0_i32, %c0_i32_0 : i32, i32
  }
  func.func @transform_6(%arg0: i32) -> (i32, i32) {
    %c0_i32 = arith.constant 0 : i32
    %c0_i32_0 = arith.constant 0 : i32
    return %c0_i32, %arg0 : i32, i32
  }
}

</mosaic_0001>

<bundles_post_ra>
// kernel: mlp_forward.1
= control target key start
LH: loop header
LB: loop body
LE: loop exit
PB: predicated region body
PF: predicated region fallthrough
CT: control target
= control target key end

     0   :  { %vm83_vm0 = vcmask 261120   ;;  %v587_v2 = vmov 0   ;;  %vm249_vm1 = vcmask 523264   ;;  %s745_s0 = inlined_call_operand.vmem [shape: f32[32,128], index: 0, kind: input, shape index: {}]   ;;  %s746_s1 = inlined_call_operand.vmem [shape: f32[64,32], index: 1, kind: input, shape index: {}]   ;;  %s747_s5 = inlined_call_operand.vmem [shape: f32[113,1], index: 5, kind: input, shape index: {}]   ;;  %s748_s4 = inlined_call_operand.vmem [shape: f32[16,1], index: 4, kind: input, shape index: {}]   ;;  %s749_s2 = inlined_call_operand.vmem [shape: f32[32,64], index: 2, kind: input, shape index: {}]   ;;  %s750_s3 = inlined_call_operand.vmem [shape: f32[16,32], index: 3, kind: input, shape index: {}]   ;;  %s751_s6 = inlined_call_operand.vmem [shape: f32[1,128], index: 6, kind: output, shape index: {}]  }
   0x1   :  { %v26_v0 = vld [vmem:[%s745_s0 + $0x18] sm:$0xff]  ;;  %v25_v1 = vld [vmem:[%s745_s0 + $0x10] sm:$0xff]  ;;  %583 = vset.pattern.permute.xlu0 %v587_v2  ;;  %584 = vset.pattern.permute.xlu1 %v587_v2  ;;  %v27_v3 = vld [vmem:[%s746_s1] sm:$0xff] }
   0x2   :  { %529 = vmatprep.subr.mxu0 %v26_v0  ;;  %v24_v4 = vld [vmem:[%s745_s0 + $0x8] sm:$0xff]  ;;  %537 = vmatprep.mubr.msk.f32.mxu0 %vm83_vm0, %v27_v3  ;;  %v23_v5 = vld [vmem:[%s745_s0] sm:$0xff]  ;;  %v42_v6 = vld [vmem:[%s747_s5 + $0x38] sm:$0xff] }
   0x3   :  { %530 = vmatpush3.msra.mxu0 %v26_v0  ;;  %v40_v7 = vld [vmem:[%s747_s5 + $0x28] sm:$0xff]  ;;  %80 = vperm.xlu0 %583, %v42_v6   ;;  %v41_v9 = vld [vmem:[%s747_s5 + $0x30] sm:$0xff]  ;;  %v39_v11 = vld [vmem:[%s747_s5 + $0x20] sm:$0xff] }
   0x4   :  { %531 = vmatprep.subr.mxu0 %v25_v1  ;;  %v28_v8 = vld [vmem:[%s746_s1 + $0x8] sm:$0xff]  ;;  %70 = vperm.xlu1 %584, %v40_v7   ;;  %v29_v10 = vld [vmem:[%s746_s1 + $0x10] sm:$0xff]  ;;  %v30_v12 = vld [vmem:[%s746_s1 + $0x18] sm:$0xff] }
   0x5   :  { %532 = vmatpush3.msra.mxu0 %v25_v1  ;;  %v38_v13 = vld [vmem:[%s747_s5 + $0x18] sm:$0xff]  ;;  %v31_v14 = vld [vmem:[%s746_s1 + $0x20] sm:$0xff]  ;;  %v37_v15 = vld [vmem:[%s747_s5 + $0x10] sm:$0xff] }
   0x6   :  { %533 = vmatprep.subr.mxu0 %v24_v4  ;;  %v32_v16 = vld [vmem:[%s746_s1 + $0x28] sm:$0xff]  ;;  %v33_v18 = vld [vmem:[%s746_s1 + $0x30] sm:$0xff]  ;;  %v35_v19 = vld [vmem:[%s747_s5] sm:$0xff] }
   0x7   :  { %534 = vmatpush3.msra.mxu0 %v24_v4  ;;  %75 = vperm.xlu0 %583, %v41_v9   ;;  %v36_v17 = vld [vmem:[%s747_s5 + $0x8] sm:$0xff]  ;;  %v34_v20 = vld [vmem:[%s746_s1 + $0x38] sm:$0xff]  ;;  %v227_v22 = vld [vmem:[%s747_s5 + $0x50] sm:$0xff] }
   0x8   :  { %535 = vmatprep.subr.mxu0 %v23_v5  ;;  %65 = vperm.xlu1 %584, %v39_v11   ;;  %v228_v21 = vld [vmem:[%s747_s5 + $0x58] sm:$0xff]  ;;  %v226_v23 = vld [vmem:[%s747_s5 + $0x48] sm:$0xff]  ;;  %v225_v24 = vld [vmem:[%s747_s5 + $0x40] sm:$0xff] }
   0x9   :  { %536 = vmatpush3.msra.mxu0 %v23_v5  ;;  %v353_v25 = vld [vmem:[%s747_s5 + $0x60] sm:$0xff]  ;;  %v354_v26 = vld [vmem:[%s747_s5 + $0x68] sm:$0xff]  ;;  %v469_v29 = vld [vmem:[%s747_s5 + $0x70] sm:$0x1] }
   0xa   :  { %538 = vmatmul.mubr.msk.f32.vlgmr.msra.gmra.mxu0 %vm83_vm0, %v28_v8  ;;  %v448_v27 = vld [vmem:[%s748_s4] sm:$0xff]  ;;  %v449_v28 = vld [vmem:[%s748_s4 + $0x8] sm:$0xff]  ;;  %v223_v0 = vld [vmem:[%s749_s2 + $0x10] sm:$0xff] }
   0xb   :  { %540 = vmatprep.mubr.msk.f32.mxu0 %vm83_vm0, %v29_v10  ;;  %60 = vperm.xlu0 %583, %v38_v13   ;;  %v221_v30 = vld [vmem:[%s749_s2] sm:$0xff]  ;;  %v222_v63 = vld [vmem:[%s749_s2 + $0x8] sm:$0xff]  ;;  %v224_v1 = vld [vmem:[%s749_s2 + $0x18] sm:$0xff] }
   0xc   :  { %55 = vperm.xlu1 %584, %v37_v15   ;;  %565 = vmatprep.mubr.msk.f32.mxu1 %vm249_vm1, %v221_v30  ;;  %v351_v2 = vld [vmem:[%s750_s3] sm:$0xff] }
   0xe   :  { %541 = vmatmul.mubr.msk.f32.gmra.mxu0 %vm83_vm0, %v30_v12 }
   0xf   :  { %543 = vmatprep.mubr.msk.f32.mxu0 %vm83_vm0, %v31_v14  ;;  %50 = vperm.xlu0 %583, %v36_v17  }
  0x10   :  { %45 = vperm.xlu1 %584, %v35_v19   ;;  %v352_v19 = vld [vmem:[%s750_s3 + $0x8] sm:$0xff] }
  0x12   :  { %544 = vmatmul.mubr.msk.f32.gmra.mxu0 %vm83_vm0, %v32_v16 }
  0x13   :  { %546 = vmatprep.mubr.msk.f32.mxu0 %vm83_vm0, %v33_v18  ;;  %246 = vperm.xlu0 %583, %v228_v21  }
  0x14   :  { %241 = vperm.xlu1 %584, %v227_v22  }
  0x16   :  { %547 = vmatmul.mubr.msk.f32.gmra.mxu0 %vm83_vm0, %v34_v20 }
  0x17   :  { %236 = vperm.xlu0 %583, %v226_v23   ;;  %579 = vmatprep.mubr.msk.f32.mxu0 %vm83_vm0, %v351_v2 }
  0x18   :  { %231 = vperm.xlu1 %584, %v225_v24  }
  0x1b   :  { %357 = vperm.xlu0 %583, %v353_v25  }
  0x1c   :  { %362 = vperm.xlu1 %584, %v354_v26  }
  0x1f   :  { %452 = vperm.xlu0 %583, %v448_v27  }
  0x20   :  { %457 = vperm.xlu1 %584, %v449_v28  }
  0x23   :  { %472 = vperm.xlu0 %583, %v469_v29  }
  0x7e   :  { %v81_v33 = vpop.permute.xlu0 %80 }
  0x7f   :  { %v71_v35 = vpop.permute.xlu1 %70 }
  0x82   :  { %v76_v38 = vpop.permute.xlu0 %75 }
  0x83   :  { %v66_v40 = vpop.permute.xlu1 %65 }
  0x86   :  { %v61_v47 = vpop.permute.xlu0 %60 }
  0x87   :  { %v56_v50 = vpop.permute.xlu1 %55 }
  0x8a   :  { %v51_v55 = vpop.permute.xlu0 %50 }
  0x8b   :  { %v46_v58 = vpop.permute.xlu1 %45 }
  0x8e   :  { %v247_v3 = vpop.permute.xlu0 %246 }
  0x8f   :  { %v242_v5 = vpop.permute.xlu1 %241 }
  0x92   :  { %v237_v9 = vpop.permute.xlu0 %236 }
  0x93   :  { %v232_v14 = vpop.permute.xlu1 %231 }
  0x96   :  { %v358_v20 = vpop.permute.xlu0 %357 }
  0x97   :  { %v363_v21 = vpop.permute.xlu1 %362 }
  0x9a   :  { %v453_v28 = vpop.permute.xlu0 %452 }
  0x9b   :  { %v458_v29 = vpop.permute.xlu1 %457 }
  0xca   :  { %v539_v31 = vpop.f32.mrf.mxu0 }
  0xcb   :  { %v180_v56 = vadd.f32 %v539_v31, %v51_v55 }
  0xcc   :  { %v174_v32 = vpop.f32.mrf.mxu0 }
  0xcd   :  { %v175_v59 = vadd.f32 %v174_v32, %v46_v58  ;;  %v214_v61 = vmax.f32 %v180_v56, 0.0 }
  0xce   :  { %v542_v34 = vpop.f32.mrf.mxu0 }
  0xcf   :  { %v190_v51 = vadd.f32 %v542_v34, %v61_v47  ;;  %v213_v62 = vmax.f32 %v175_v59, 0.0 }
  0xd0   :  { %v184_v36 = vpop.f32.mrf.mxu0 }
  0xd1   :  { %v185_v53 = vadd.f32 %v184_v36, %v56_v50  ;;  %v216_v57 = vmax.f32 %v190_v51, 0.0 }
  0xd2   :  { %v545_v37 = vpop.f32.mrf.mxu0 }
  0xd3   :  { %v200_v44 = vadd.f32 %v545_v37, %v71_v35  ;;  %v215_v60 = vmax.f32 %v185_v53, 0.0 }
  0xd4   :  { %v194_v39 = vpop.f32.mrf.mxu0 }
  0xd5   :  { %v195_v48 = vadd.f32 %v194_v39, %v66_v40  ;;  %v218_v52 = vmax.f32 %v200_v44, 0.0  ;;  %v473_v39 = vpop.permute.xlu0 %472 }
  0xd6   :  { %v548_v41 = vpop.f32.mrf.mxu0 }
  0xd7   :  { %v210_v42 = vadd.f32 %v548_v41, %v81_v33  ;;  %v217_v54 = vmax.f32 %v195_v48, 0.0 }
  0xd8   :  { %v204_v43 = vpop.f32.mrf.mxu0 }
  0xd9   :  { %v220_v45 = vmax.f32 %v210_v42, 0.0  ;;  %v205_v46 = vadd.f32 %v204_v43, %v76_v38 }
  0xdb   :  { %v219_v49 = vmax.f32 %v205_v46, 0.0  ;;  %549 = vmatprep.subr.mxu1 %v220_v45 }
  0xdc   :  { %550 = vmatpush3.msra.mxu1 %v220_v45 }
  0xdd   :  { %551 = vmatprep.subr.mxu1 %v219_v49 }
  0xde   :  { %552 = vmatpush3.msra.mxu1 %v219_v49 }
  0xdf   :  { %553 = vmatprep.subr.mxu1 %v218_v52 }
  0xe0   :  { %554 = vmatpush3.msra.mxu1 %v218_v52 }
  0xe1   :  { %555 = vmatprep.subr.mxu1 %v217_v54 }
  0xe2   :  { %556 = vmatpush3.msra.mxu1 %v217_v54 }
  0xe3   :  { %557 = vmatprep.subr.mxu1 %v216_v57 }
  0xe4   :  { %558 = vmatpush3.msra.mxu1 %v216_v57 }
  0xe5   :  { %559 = vmatprep.subr.mxu1 %v215_v60 }
  0xe6   :  { %560 = vmatpush3.msra.mxu1 %v215_v60 }
  0xe7   :  { %561 = vmatprep.subr.mxu1 %v214_v61 }
  0xe8   :  { %562 = vmatpush3.msra.mxu1 %v214_v61 }
  0xe9   :  { %563 = vmatprep.subr.mxu1 %v213_v62 }
  0xea   :  { %564 = vmatpush3.msra.mxu1 %v213_v62 }
  0xeb   :  { %566 = vmatmul.mubr.msk.f32.vlgmr.msra.gmra.mxu1 %vm249_vm1, %v222_v63 }
  0xec   :  { %568 = vmatprep.mubr.msk.f32.mxu1 %vm249_vm1, %v223_v0 }
  0xef   :  { %569 = vmatmul.mubr.msk.f32.gmra.mxu1 %vm249_vm1, %v224_v1 }
 0x1ab   :  { %v567_v4 = vpop.f32.mrf.mxu1 }
 0x1ac   :  { %v334_v11 = vadd.f32 %v567_v4, %v237_v9 }
 0x1ad   :  { %v328_v6 = vpop.f32.mrf.mxu1 }
 0x1ae   :  { %v329_v15 = vadd.f32 %v328_v6, %v232_v14  ;;  %v348_v17 = vmax.f32 %v334_v11, 0.0 }
 0x1af   :  { %v570_v7 = vpop.f32.mrf.mxu1 }
 0x1b0   :  { %v344_v8 = vadd.f32 %v570_v7, %v247_v3  ;;  %v347_v18 = vmax.f32 %v329_v15, 0.0 }
 0x1b1   :  { %v338_v10 = vpop.f32.mrf.mxu1 }
 0x1b2   :  { %v350_v12 = vmax.f32 %v344_v8, 0.0  ;;  %v339_v13 = vadd.f32 %v338_v10, %v242_v5 }
 0x1b4   :  { %v349_v16 = vmax.f32 %v339_v13, 0.0  ;;  %571 = vmatprep.subr.mxu0 %v350_v12 }
 0x1b5   :  { %572 = vmatpush3.msra.mxu0 %v350_v12 }
 0x1b6   :  { %573 = vmatprep.subr.mxu0 %v349_v16 }
 0x1b7   :  { %574 = vmatpush3.msra.mxu0 %v349_v16 }
 0x1b8   :  { %575 = vmatprep.subr.mxu0 %v348_v17 }
 0x1b9   :  { %576 = vmatpush3.msra.mxu0 %v348_v17 }
 0x1ba   :  { %577 = vmatprep.subr.mxu0 %v347_v18 }
 0x1bb   :  { %578 = vmatpush3.msra.mxu0 %v347_v18 }
 0x1bc   :  { %580 = vmatmul.mubr.msk.f32.vlgmr.msra.gmra.mxu0 %vm83_vm0, %v352_v19 }
 0x27c   :  { %v581_v22 = vpop.f32.mrf.mxu0 }
 0x27d   :  { %v443_v23 = vadd.f32 %v581_v22, %v363_v21 }
 0x27e   :  { %v437_v24 = vpop.f32.mrf.mxu0 }
 0x27f   :  { %v447_v25 = vmax.f32 %v443_v23, 0.0  ;;  %v438_v26 = vadd.f32 %v437_v24, %v358_v20 }
 0x281   :  { %v446_v27 = vmax.f32 %v438_v26, 0.0  ;;  %v461_v30 = vmul.f32 %v458_v29, %v447_v25 }
 0x283   :  { %v460_v31 = vmul.f32 %v453_v28, %v446_v27 }
 0x285   :  { %v462_v32 = vadd.f32 %v461_v30, %v460_v31 }
 0x287   :  { %v463_v33 = vrot.slane %v462_v32, 4 }
 0x289   :  { %v464_v34 = vadd.f32 %v463_v33, %v462_v32 }
 0x28b   :  { %v465_v35 = vrot.slane %v464_v34, 2 }
 0x28d   :  { %v466_v36 = vadd.f32 %v465_v35, %v464_v34 }
 0x28f   :  { %v467_v37 = vrot.slane %v466_v36, 1 }
 0x291   :  { %v468_v38 = vadd.f32 %v467_v37, %v466_v36 }
 0x293   :  { %v475_v40 = vadd.f32 %v473_v39, %v468_v38 }
 0x295   :  { %v476_v41 = vmul.f32 0.5, %v475_v40 }
 0x297   :  { %585 = vtanh.f32 %v476_v41 }
 0x2a4   :  { %v586_v42 = vpop.eup %585 }
 0x2a5   :  { %v478_v43 = vadd.f32 1.0, %v586_v42 }
 0x2a7   :  { %v479_v44 = vmul.f32 0.5, %v478_v43 }
 0x2a9   :  { %480 = vst [vmem:[%s751_s6] sm:$0x1] %v479_v44 }

</bundles_post_ra>
